<compile_context>
chip_gen: v7x
topology: tpu7x:2x2x1
jax: 0.10.0
libtpu: 0.0.40
codegen_flags: <defaults>
</compile_context>

<pallas_src>
import functools

import jax
import jax.numpy as jnp
from jax.experimental import pallas as pl
from jax.experimental.pallas import tpu as pltpu

BN_EPS = 1e-5


# ---------------------------------------------------------------------------
# Fused kernel: (sel+BN1) -> ReLU -> 1x1 grouped conv (+BN2) -> ReLU
#               -> 3x3 grouped conv (pad=1) -> concat([x, y], channel)
#   x_ref   : (Cx, H*W)           one image, channels on sublanes, spatial on lanes
#   wsel_ref: (Cin, Cx)           selection matrix with BN1 scale folded in
#   b1_ref  : (Cin, 1)            BN1 bias
#   w1_ref  : (Cmid, Cin)         block-diagonal 1x1 weights, BN2 scale folded in
#   b2_ref  : (Cmid, 1)           BN2 bias
#   w2_ref  : (9, Cout, Cmid)     dense per-tap 3x3 weights (zeros off the group blocks)
#   mask_ref: (9, H*W)            {0,1} border-validity mask per tap
#   o_ref   : (Cx+Cout, H*W)      concat output (lane-dense store)
# ---------------------------------------------------------------------------
def _dense_layer_kernel(x_ref, wsel_ref, b1_ref, w1_ref, b2_ref, w2_ref, mask_ref,
                        o_ref, *, H, W, Cx, Cout):
    HW = H * W
    x = x_ref[...]                                                      # (Cx, HW)

    # channel selection + BN1 (scale folded into wsel) + ReLU   -> (Cin, HW)
    h = jnp.dot(wsel_ref[...], x, preferred_element_type=jnp.float32) + b1_ref[...]
    h = jnp.maximum(h, 0.0)

    # grouped 1x1 conv as one block-diagonal dense matmul (+ folded BN2) + ReLU -> (Cmid, HW)
    a = jnp.dot(w1_ref[...], h, preferred_element_type=jnp.float32) + b2_ref[...]
    a = jnp.maximum(a, 0.0)

    # 3x3 "same" grouped conv: 9 dense per-tap matmuls; shift the small (Cout, HW)
    # partial result by the tap offset (static lane slices) and zero the border.
    masks = mask_ref[...]                                               # (9, HW)
    acc = jnp.zeros((Cout, HW), jnp.float32)
    for ky in range(3):
        for kx in range(3):
            tap = ky * 3 + kx
            u = jnp.dot(w2_ref[tap], a, preferred_element_type=jnp.float32)  # (Cout, HW)
            d = ((ky - 1) * W + (kx - 1)) % HW      # dest i reads source i + d (circular)
            if d != 0:
                u = jnp.concatenate([u[:, d:], u[:, :d]], axis=-1)
            if tap != 4:                            # center tap needs no border mask
                u = u * masks[tap:tap + 1, :]
            acc = acc + u

    # torch.cat([x_, y], channel): two lane-dense stores into the output slab
    o_ref[0:Cx, :] = x.astype(o_ref.dtype)
    o_ref[Cx:, :] = acc.astype(o_ref.dtype)


def dense_layer_forward(x_nchw, packed):
    """Fused _DenseLayer forward on NCHW input.  Returns NCHW (N, Cx + growth, H, W)."""
    N, Cx, H, W = x_nchw.shape
    Cin = packed["wsel"].shape[0]
    Cmid = packed["w1"].shape[0]
    Cout = packed["w2"].shape[1]
    Ctot = Cx + Cout
    HW = H * W
    assert packed["wsel"].shape[1] == Cx and packed["w1"].shape[1] == Cin

    x_flat = x_nchw.reshape(N, Cx, HW)   # free, layout-preserving

    # {0,1} validity masks for the 9 taps of the padded 3x3 conv (built once, tiny).
    hh = jnp.arange(H)
    ww = jnp.arange(W)
    mask_list = []
    for dy in (-1, 0, 1):
        rok = ((hh + dy >= 0) & (hh + dy < H)).astype(jnp.float32)      # (H,)
        for dx in (-1, 0, 1):
            cok = ((ww + dx >= 0) & (ww + dx < W)).astype(jnp.float32)  # (W,)
            mask_list.append((rok[:, None] * cok[None, :]).reshape(HW))
    masks = jnp.stack(mask_list, axis=0)                                # (9, HW)

    kernel = functools.partial(_dense_layer_kernel, H=H, W=W, Cx=Cx, Cout=Cout)
    out = pl.pallas_call(
        kernel,
        out_shape=jax.ShapeDtypeStruct((N, Ctot, HW), x_nchw.dtype),
        grid=(N,),
        in_specs=[
            pl.BlockSpec((None, Cx, HW), lambda n: (n, 0, 0)),
            pl.BlockSpec((Cin, Cx), lambda n: (0, 0)),
            pl.BlockSpec((Cin, 1), lambda n: (0, 0)),
            pl.BlockSpec((Cmid, Cin), lambda n: (0, 0)),
            pl.BlockSpec((Cmid, 1), lambda n: (0, 0)),
            pl.BlockSpec((9, Cout, Cmid), lambda n: (0, 0, 0)),
            pl.BlockSpec((9, HW), lambda n: (0, 0)),
        ],
        out_specs=pl.BlockSpec((None, Ctot, HW), lambda n: (n, 0, 0)),
        compiler_params=pltpu.CompilerParams(dimension_semantics=("parallel",)),
    )(x_flat, packed["wsel"], packed["b1"], packed["w1"], packed["b2"],
      packed["w2"], masks)

    return out.reshape(N, Ctot, H, W)


# ---------------------------------------------------------------------------
# Wrapper-side weight / BN folding (done once, outside the kernel).
# ---------------------------------------------------------------------------
def pack_params(index, bn1, w1_torch, bn2, w2_torch, group_1x1, group_3x3,
                x_channels, eps=BN_EPS):
    gamma1, beta1, mean1, var1 = bn1
    gamma2, beta2, mean2, var2 = bn2
    Cin = index.shape[0]
    Cmid, cig1 = w1_torch.shape[0], w1_torch.shape[1]
    Cout, cig2 = w2_torch.shape[0], w2_torch.shape[1]
    cog1 = Cmid // group_1x1
    cog2 = Cout // group_3x3

    scale1 = gamma1 * jax.lax.rsqrt(var1 + eps)
    bias1 = beta1 - mean1 * scale1
    scale2 = gamma2 * jax.lax.rsqrt(var2 + eps)
    bias2 = beta2 - mean2 * scale2

    # index_select + BN1 scale as (Cin, Cx): h = wsel @ x -> h[c] = scale1[c] * x[index[c]]
    wsel = scale1[:, None] * jax.nn.one_hot(index, x_channels, dtype=jnp.float32)

    # grouped 1x1 conv as block-diagonal (Cmid, Cin) matrix, BN2 scale folded into rows
    w1sq = w1_torch[:, :, 0, 0]                              # (Cmid, cig1)
    w1bd = jnp.zeros((Cmid, Cin), jnp.float32)
    for g in range(group_1x1):
        w1bd = w1bd.at[g * cog1:(g + 1) * cog1, g * cig1:(g + 1) * cig1].set(
            w1sq[g * cog1:(g + 1) * cog1])
    w1bd = w1bd * scale2[:, None]

    # grouped 3x3 conv as 9 dense (Cout, Cmid) per-tap matrices (zeros off group blocks)
    w2hw = jnp.transpose(w2_torch, (2, 3, 0, 1))             # (3, 3, Cout, cig2)
    w2d = jnp.zeros((3, 3, Cout, Cmid), jnp.float32)
    for g in range(group_3x3):
        w2d = w2d.at[:, :, g * cog2:(g + 1) * cog2, g * cig2:(g + 1) * cig2].set(
            w2hw[:, :, g * cog2:(g + 1) * cog2, :])
    w2d = w2d.reshape(9, Cout, Cmid)

    return {
        "wsel": wsel,
        "b1": bias1[:, None].astype(jnp.float32),
        "w1": w1bd,
        "b2": bias2[:, None].astype(jnp.float32),
        "w2": w2d,
    }


# ---------------------------------------------------------------------------
# Pure-JAX reference (eval-mode BN + lax grouped convs, NCHW) for verification.
# ---------------------------------------------------------------------------
def reference_forward(x_nchw, p, g1_groups, g3_groups):
    xs = jnp.take(x_nchw, p["index"], axis=1)
    gamma1, beta1, mean1, var1 = [v.reshape(1, -1, 1, 1) for v in p["bn1"]]
    h = jnp.maximum((xs - mean1) / jnp.sqrt(var1 + BN_EPS) * gamma1 + beta1, 0.0)
    z = jax.lax.conv_general_dilated(
        h, p["w1_torch"], (1, 1), "VALID",
        dimension_numbers=("NCHW", "OIHW", "NCHW"),
        feature_group_count=g1_groups)
    gamma2, beta2, mean2, var2 = [v.reshape(1, -1, 1, 1) for v in p["bn2"]]
    a = jnp.maximum((z - mean2) / jnp.sqrt(var2 + BN_EPS) * gamma2 + beta2, 0.0)
    y = jax.lax.conv_general_dilated(
        a, p["w2_torch"], (1, 1), ((1, 1), (1, 1)),
        dimension_numbers=("NCHW", "OIHW", "NCHW"),
        feature_group_count=g3_groups)
    return jnp.concatenate([x_nchw, y], axis=1)


if __name__ == "__main__":
    # Config consistent with the module: args.bottleneck=4, growth_rate=4,
    # in_channels=8, group_1x1=2, group_3x3=2  -> mid channels = 16.
    N, H, W = 2, 16, 16
    in_channels, growth_rate, bottleneck = 8, 4, 4
    group_1x1, group_3x3 = 2, 2
    Cmid = bottleneck * growth_rate  # 16

    key = jax.random.PRNGKey(0)
    ks = jax.random.split(key, 12)

    # Input in PyTorch NCHW convention (the kernel consumes NCHW directly).
    x_nchw = jax.random.normal(ks[0], (N, in_channels, H, W), jnp.float32)

    # Deterministic "learned" channel index (CondenseConv index buffer).
    index = ((jnp.arange(in_channels, dtype=jnp.int32) * 3 + 1) % in_channels)

    # BN params: gamma, beta, running_mean, running_var.
    gamma1 = 1.0 + 0.1 * jax.random.normal(ks[1], (in_channels,), jnp.float32)
    beta1 = 0.1 * jax.random.normal(ks[2], (in_channels,), jnp.float32)
    mean1 = 0.1 * jax.random.normal(ks[3], (in_channels,), jnp.float32)
    var1 = jnp.abs(jax.random.normal(ks[4], (in_channels,), jnp.float32)) + 0.5

    gamma2 = 1.0 + 0.1 * jax.random.normal(ks[5], (Cmid,), jnp.float32)
    beta2 = 0.1 * jax.random.normal(ks[6], (Cmid,), jnp.float32)
    mean2 = 0.1 * jax.random.normal(ks[7], (Cmid,), jnp.float32)
    var2 = jnp.abs(jax.random.normal(ks[8], (Cmid,), jnp.float32)) + 0.5

    # Conv weights in PyTorch layout (Cout, Cin/groups, kH, kW), no bias.
    w1_torch = 0.2 * jax.random.normal(
        ks[9], (Cmid, in_channels // group_1x1, 1, 1), jnp.float32)
    w2_torch = 0.2 * jax.random.normal(
        ks[10], (growth_rate, Cmid // group_3x3, 3, 3), jnp.float32)

    packed = pack_params(index,
                         (gamma1, beta1, mean1, var1), w1_torch,
                         (gamma2, beta2, mean2, var2), w2_torch,
                         group_1x1, group_3x3, x_channels=in_channels)

    fwd = jax.jit(lambda x: dense_layer_forward(x, packed))
    out = jax.block_until_ready(fwd(x_nchw))

    expected_shape = (N, in_channels + growth_rate, H, W)
    assert out.shape == expected_shape, (out.shape, expected_shape)

    ref_params = {
        "index": index,
        "bn1": (gamma1, beta1, mean1, var1),
        "bn2": (gamma2, beta2, mean2, var2),
        "w1_torch": w1_torch,
        "w2_torch": w2_torch,
    }
    ref = jax.block_until_ready(
        reference_forward(x_nchw, ref_params, group_1x1, group_3x3))
    assert jnp.allclose(out, ref, atol=1e-4, rtol=1e-4), (
        float(jnp.max(jnp.abs(out - ref))))

    print("KERNEL_OK")
</pallas_src>

<mosaic_0001>
module attributes {stable_mosaic.version = 11 : i64} {
  func.func @_dense_layer_kernel(%arg0: i32, %arg1: memref<1x8x256xf32, #tpu.memory_space<vmem>>, %arg2: memref<8x8xf32, #tpu.memory_space<vmem>>, %arg3: memref<8x1xf32, #tpu.memory_space<vmem>>, %arg4: memref<16x8xf32, #tpu.memory_space<vmem>>, %arg5: memref<16x1xf32, #tpu.memory_space<vmem>>, %arg6: memref<9x4x16xf32, #tpu.memory_space<vmem>>, %arg7: memref<9x256xf32, #tpu.memory_space<vmem>>, %arg8: memref<1x12x256xf32, #tpu.memory_space<vmem>>) attributes {dimension_semantics = [#tpu.dimension_semantics<parallel>], iteration_bounds = array<i64: 2>, scalar_prefetch = 0 : i64, scratch_operands = 0 : i64, tpu.core_type = #tpu.core_type<tc>, window_params = [{transform_indices = @transform_0, window_bounds = array<i64: 1, 8, 256>}, {pipeline_mode = #tpu.pipeline_mode<synchronous>, transform_indices = @transform_1, window_bounds = array<i64: 8, 8>}, {pipeline_mode = #tpu.pipeline_mode<synchronous>, transform_indices = @transform_2, window_bounds = array<i64: 8, 1>}, {pipeline_mode = #tpu.pipeline_mode<synchronous>, transform_indices = @transform_3, window_bounds = array<i64: 16, 8>}, {pipeline_mode = #tpu.pipeline_mode<synchronous>, transform_indices = @transform_4, window_bounds = array<i64: 16, 1>}, {pipeline_mode = #tpu.pipeline_mode<synchronous>, transform_indices = @transform_5, window_bounds = array<i64: 9, 4, 16>}, {pipeline_mode = #tpu.pipeline_mode<synchronous>, transform_indices = @transform_6, window_bounds = array<i64: 9, 256>}, {transform_indices = @transform_7, window_bounds = array<i64: 1, 12, 256>}]} {
    %c0 = arith.constant 0 : index
    %c0_0 = arith.constant 0 : index
    %c0_1 = arith.constant 0 : index
    %0 = vector.load %arg1[%c0, %c0_0, %c0_1] : memref<1x8x256xf32, #tpu.memory_space<vmem>>, vector<1x8x256xf32>
    %1 = vector.shape_cast %0 : vector<1x8x256xf32> to vector<8x256xf32>
    %c0_2 = arith.constant 0 : index
    %c0_3 = arith.constant 0 : index
    %2 = vector.load %arg2[%c0_2, %c0_3] : memref<8x8xf32, #tpu.memory_space<vmem>>, vector<8x8xf32>
    %cst = arith.constant dense<0.000000e+00> : vector<8x256xf32>
    %3 = tpu.matmul %2, %1, %cst {dimension_numbers = #tpu.dot_dimension_numbers<[1], [0], [0], [1], [0, 0, 1, 1], [], []>} : vector<8x8xf32>, vector<8x256xf32>, vector<8x256xf32> -> vector<8x256xf32>
    %c0_4 = arith.constant 0 : index
    %c0_5 = arith.constant 0 : index
    %4 = vector.load %arg3[%c0_4, %c0_5] : memref<8x1xf32, #tpu.memory_space<vmem>>, vector<8x1xf32>
    %5 = vector.broadcast %4 : vector<8x1xf32> to vector<8x256xf32>
    %6 = arith.addf %3, %5 : vector<8x256xf32>
    %cst_6 = arith.constant 0.000000e+00 : f32
    %7 = vector.broadcast %cst_6 : f32 to vector<8x256xf32>
    %8 = arith.maximumf %6, %7 : vector<8x256xf32>
    %c0_7 = arith.constant 0 : index
    %c0_8 = arith.constant 0 : index
    %9 = vector.load %arg4[%c0_7, %c0_8] : memref<16x8xf32, #tpu.memory_space<vmem>>, vector<16x8xf32>
    %cst_9 = arith.constant dense<0.000000e+00> : vector<16x256xf32>
    %10 = tpu.matmul %9, %8, %cst_9 {dimension_numbers = #tpu.dot_dimension_numbers<[1], [0], [0], [1], [0, 0, 1, 1], [], []>} : vector<16x8xf32>, vector<8x256xf32>, vector<16x256xf32> -> vector<16x256xf32>
    %c0_10 = arith.constant 0 : index
    %c0_11 = arith.constant 0 : index
    %11 = vector.load %arg5[%c0_10, %c0_11] : memref<16x1xf32, #tpu.memory_space<vmem>>, vector<16x1xf32>
    %12 = vector.broadcast %11 : vector<16x1xf32> to vector<16x256xf32>
    %13 = arith.addf %10, %12 : vector<16x256xf32>
    %cst_12 = arith.constant 0.000000e+00 : f32
    %14 = vector.broadcast %cst_12 : f32 to vector<16x256xf32>
    %15 = arith.maximumf %13, %14 : vector<16x256xf32>
    %c0_13 = arith.constant 0 : index
    %c0_14 = arith.constant 0 : index
    %16 = vector.load %arg7[%c0_13, %c0_14] : memref<9x256xf32, #tpu.memory_space<vmem>>, vector<9x256xf32>
    %cst_15 = arith.constant 0.000000e+00 : f32
    %17 = vector.broadcast %cst_15 : f32 to vector<4x256xf32>
    %c0_16 = arith.constant 0 : index
    %c0_17 = arith.constant 0 : index
    %c0_18 = arith.constant 0 : index
    %18 = vector.load %arg6[%c0_16, %c0_17, %c0_18] : memref<9x4x16xf32, #tpu.memory_space<vmem>>, vector<1x4x16xf32>
    %19 = vector.shape_cast %18 : vector<1x4x16xf32> to vector<4x16xf32>
    %cst_19 = arith.constant dense<0.000000e+00> : vector<4x256xf32>
    %20 = tpu.matmul %19, %15, %cst_19 {dimension_numbers = #tpu.dot_dimension_numbers<[1], [0], [0], [1], [0, 0, 1, 1], [], []>} : vector<4x16xf32>, vector<16x256xf32>, vector<4x256xf32> -> vector<4x256xf32>
    %21 = vector.extract_strided_slice %20 {offsets = [0, 239], sizes = [4, 17], strides = [1, 1]} : vector<4x256xf32> to vector<4x17xf32>
    %22 = vector.extract_strided_slice %20 {offsets = [0, 0], sizes = [4, 239], strides = [1, 1]} : vector<4x256xf32> to vector<4x239xf32>
    %23 = tpu.concatenate %21, %22 in 1 : vector<4x17xf32>, vector<4x239xf32> -> vector<4x256xf32>
    %24 = vector.extract_strided_slice %16 {offsets = [0, 0], sizes = [1, 256], strides = [1, 1]} : vector<9x256xf32> to vector<1x256xf32>
    %25 = vector.broadcast %24 : vector<1x256xf32> to vector<4x256xf32>
    %26 = arith.mulf %23, %25 : vector<4x256xf32>
    %27 = arith.addf %17, %26 : vector<4x256xf32>
    %c1 = arith.constant 1 : index
    %c0_20 = arith.constant 0 : index
    %c0_21 = arith.constant 0 : index
    %28 = vector.load %arg6[%c1, %c0_20, %c0_21] : memref<9x4x16xf32, #tpu.memory_space<vmem>>, vector<1x4x16xf32>
    %29 = vector.shape_cast %28 : vector<1x4x16xf32> to vector<4x16xf32>
    %cst_22 = arith.constant dense<0.000000e+00> : vector<4x256xf32>
    %30 = tpu.matmul %29, %15, %cst_22 {dimension_numbers = #tpu.dot_dimension_numbers<[1], [0], [0], [1], [0, 0, 1, 1], [], []>} : vector<4x16xf32>, vector<16x256xf32>, vector<4x256xf32> -> vector<4x256xf32>
    %31 = vector.extract_strided_slice %30 {offsets = [0, 240], sizes = [4, 16], strides = [1, 1]} : vector<4x256xf32> to vector<4x16xf32>
    %32 = vector.extract_strided_slice %30 {offsets = [0, 0], sizes = [4, 240], strides = [1, 1]} : vector<4x256xf32> to vector<4x240xf32>
    %33 = tpu.concatenate %31, %32 in 1 : vector<4x16xf32>, vector<4x240xf32> -> vector<4x256xf32>
    %34 = vector.extract_strided_slice %16 {offsets = [1, 0], sizes = [1, 256], strides = [1, 1]} : vector<9x256xf32> to vector<1x256xf32>
    %35 = vector.broadcast %34 : vector<1x256xf32> to vector<4x256xf32>
    %36 = arith.mulf %33, %35 : vector<4x256xf32>
    %37 = arith.addf %27, %36 : vector<4x256xf32>
    %c2 = arith.constant 2 : index
    %c0_23 = arith.constant 0 : index
    %c0_24 = arith.constant 0 : index
    %38 = vector.load %arg6[%c2, %c0_23, %c0_24] : memref<9x4x16xf32, #tpu.memory_space<vmem>>, vector<1x4x16xf32>
    %39 = vector.shape_cast %38 : vector<1x4x16xf32> to vector<4x16xf32>
    %cst_25 = arith.constant dense<0.000000e+00> : vector<4x256xf32>
    %40 = tpu.matmul %39, %15, %cst_25 {dimension_numbers = #tpu.dot_dimension_numbers<[1], [0], [0], [1], [0, 0, 1, 1], [], []>} : vector<4x16xf32>, vector<16x256xf32>, vector<4x256xf32> -> vector<4x256xf32>
    %41 = vector.extract_strided_slice %40 {offsets = [0, 241], sizes = [4, 15], strides = [1, 1]} : vector<4x256xf32> to vector<4x15xf32>
    %42 = vector.extract_strided_slice %40 {offsets = [0, 0], sizes = [4, 241], strides = [1, 1]} : vector<4x256xf32> to vector<4x241xf32>
    %43 = tpu.concatenate %41, %42 in 1 : vector<4x15xf32>, vector<4x241xf32> -> vector<4x256xf32>
    %44 = vector.extract_strided_slice %16 {offsets = [2, 0], sizes = [1, 256], strides = [1, 1]} : vector<9x256xf32> to vector<1x256xf32>
    %45 = vector.broadcast %44 : vector<1x256xf32> to vector<4x256xf32>
    %46 = arith.mulf %43, %45 : vector<4x256xf32>
    %47 = arith.addf %37, %46 : vector<4x256xf32>
    %c3 = arith.constant 3 : index
    %c0_26 = arith.constant 0 : index
    %c0_27 = arith.constant 0 : index
    %48 = vector.load %arg6[%c3, %c0_26, %c0_27] : memref<9x4x16xf32, #tpu.memory_space<vmem>>, vector<1x4x16xf32>
    %49 = vector.shape_cast %48 : vector<1x4x16xf32> to vector<4x16xf32>
    %cst_28 = arith.constant dense<0.000000e+00> : vector<4x256xf32>
    %50 = tpu.matmul %49, %15, %cst_28 {dimension_numbers = #tpu.dot_dimension_numbers<[1], [0], [0], [1], [0, 0, 1, 1], [], []>} : vector<4x16xf32>, vector<16x256xf32>, vector<4x256xf32> -> vector<4x256xf32>
    %51 = vector.extract_strided_slice %50 {offsets = [0, 255], sizes = [4, 1], strides = [1, 1]} : vector<4x256xf32> to vector<4x1xf32>
    %52 = vector.extract_strided_slice %50 {offsets = [0, 0], sizes = [4, 255], strides = [1, 1]} : vector<4x256xf32> to vector<4x255xf32>
    %53 = tpu.concatenate %51, %52 in 1 : vector<4x1xf32>, vector<4x255xf32> -> vector<4x256xf32>
    %54 = vector.extract_strided_slice %16 {offsets = [3, 0], sizes = [1, 256], strides = [1, 1]} : vector<9x256xf32> to vector<1x256xf32>
    %55 = vector.broadcast %54 : vector<1x256xf32> to vector<4x256xf32>
    %56 = arith.mulf %53, %55 : vector<4x256xf32>
    %57 = arith.addf %47, %56 : vector<4x256xf32>
    %c4 = arith.constant 4 : index
    %c0_29 = arith.constant 0 : index
    %c0_30 = arith.constant 0 : index
    %58 = vector.load %arg6[%c4, %c0_29, %c0_30] : memref<9x4x16xf32, #tpu.memory_space<vmem>>, vector<1x4x16xf32>
    %59 = vector.shape_cast %58 : vector<1x4x16xf32> to vector<4x16xf32>
    %cst_31 = arith.constant dense<0.000000e+00> : vector<4x256xf32>
    %60 = tpu.matmul %59, %15, %cst_31 {dimension_numbers = #tpu.dot_dimension_numbers<[1], [0], [0], [1], [0, 0, 1, 1], [], []>} : vector<4x16xf32>, vector<16x256xf32>, vector<4x256xf32> -> vector<4x256xf32>
    %61 = arith.addf %57, %60 : vector<4x256xf32>
    %c5 = arith.constant 5 : index
    %c0_32 = arith.constant 0 : index
    %c0_33 = arith.constant 0 : index
    %62 = vector.load %arg6[%c5, %c0_32, %c0_33] : memref<9x4x16xf32, #tpu.memory_space<vmem>>, vector<1x4x16xf32>
    %63 = vector.shape_cast %62 : vector<1x4x16xf32> to vector<4x16xf32>
    %cst_34 = arith.constant dense<0.000000e+00> : vector<4x256xf32>
    %64 = tpu.matmul %63, %15, %cst_34 {dimension_numbers = #tpu.dot_dimension_numbers<[1], [0], [0], [1], [0, 0, 1, 1], [], []>} : vector<4x16xf32>, vector<16x256xf32>, vector<4x256xf32> -> vector<4x256xf32>
    %65 = vector.extract_strided_slice %64 {offsets = [0, 1], sizes = [4, 255], strides = [1, 1]} : vector<4x256xf32> to vector<4x255xf32>
    %66 = vector.extract_strided_slice %64 {offsets = [0, 0], sizes = [4, 1], strides = [1, 1]} : vector<4x256xf32> to vector<4x1xf32>
    %67 = tpu.concatenate %65, %66 in 1 : vector<4x255xf32>, vector<4x1xf32> -> vector<4x256xf32>
    %68 = vector.extract_strided_slice %16 {offsets = [5, 0], sizes = [1, 256], strides = [1, 1]} : vector<9x256xf32> to vector<1x256xf32>
    %69 = vector.broadcast %68 : vector<1x256xf32> to vector<4x256xf32>
    %70 = arith.mulf %67, %69 : vector<4x256xf32>
    %71 = arith.addf %61, %70 : vector<4x256xf32>
    %c6 = arith.constant 6 : index
    %c0_35 = arith.constant 0 : index
    %c0_36 = arith.constant 0 : index
    %72 = vector.load %arg6[%c6, %c0_35, %c0_36] : memref<9x4x16xf32, #tpu.memory_space<vmem>>, vector<1x4x16xf32>
    %73 = vector.shape_cast %72 : vector<1x4x16xf32> to vector<4x16xf32>
    %cst_37 = arith.constant dense<0.000000e+00> : vector<4x256xf32>
    %74 = tpu.matmul %73, %15, %cst_37 {dimension_numbers = #tpu.dot_dimension_numbers<[1], [0], [0], [1], [0, 0, 1, 1], [], []>} : vector<4x16xf32>, vector<16x256xf32>, vector<4x256xf32> -> vector<4x256xf32>
    %75 = vector.extract_strided_slice %74 {offsets = [0, 15], sizes = [4, 241], strides = [1, 1]} : vector<4x256xf32> to vector<4x241xf32>
    %76 = vector.extract_strided_slice %74 {offsets = [0, 0], sizes = [4, 15], strides = [1, 1]} : vector<4x256xf32> to vector<4x15xf32>
    %77 = tpu.concatenate %75, %76 in 1 : vector<4x241xf32>, vector<4x15xf32> -> vector<4x256xf32>
    %78 = vector.extract_strided_slice %16 {offsets = [6, 0], sizes = [1, 256], strides = [1, 1]} : vector<9x256xf32> to vector<1x256xf32>
    %79 = vector.broadcast %78 : vector<1x256xf32> to vector<4x256xf32>
    %80 = arith.mulf %77, %79 : vector<4x256xf32>
    %81 = arith.addf %71, %80 : vector<4x256xf32>
    %c7 = arith.constant 7 : index
    %c0_38 = arith.constant 0 : index
    %c0_39 = arith.constant 0 : index
    %82 = vector.load %arg6[%c7, %c0_38, %c0_39] : memref<9x4x16xf32, #tpu.memory_space<vmem>>, vector<1x4x16xf32>
    %83 = vector.shape_cast %82 : vector<1x4x16xf32> to vector<4x16xf32>
    %cst_40 = arith.constant dense<0.000000e+00> : vector<4x256xf32>
    %84 = tpu.matmul %83, %15, %cst_40 {dimension_numbers = #tpu.dot_dimension_numbers<[1], [0], [0], [1], [0, 0, 1, 1], [], []>} : vector<4x16xf32>, vector<16x256xf32>, vector<4x256xf32> -> vector<4x256xf32>
    %85 = vector.extract_strided_slice %84 {offsets = [0, 16], sizes = [4, 240], strides = [1, 1]} : vector<4x256xf32> to vector<4x240xf32>
    %86 = vector.extract_strided_slice %84 {offsets = [0, 0], sizes = [4, 16], strides = [1, 1]} : vector<4x256xf32> to vector<4x16xf32>
    %87 = tpu.concatenate %85, %86 in 1 : vector<4x240xf32>, vector<4x16xf32> -> vector<4x256xf32>
    %88 = vector.extract_strided_slice %16 {offsets = [7, 0], sizes = [1, 256], strides = [1, 1]} : vector<9x256xf32> to vector<1x256xf32>
    %89 = vector.broadcast %88 : vector<1x256xf32> to vector<4x256xf32>
    %90 = arith.mulf %87, %89 : vector<4x256xf32>
    %91 = arith.addf %81, %90 : vector<4x256xf32>
    %c8 = arith.constant 8 : index
    %c0_41 = arith.constant 0 : index
    %c0_42 = arith.constant 0 : index
    %92 = vector.load %arg6[%c8, %c0_41, %c0_42] : memref<9x4x16xf32, #tpu.memory_space<vmem>>, vector<1x4x16xf32>
    %93 = vector.shape_cast %92 : vector<1x4x16xf32> to vector<4x16xf32>
    %cst_43 = arith.constant dense<0.000000e+00> : vector<4x256xf32>
    %94 = tpu.matmul %93, %15, %cst_43 {dimension_numbers = #tpu.dot_dimension_numbers<[1], [0], [0], [1], [0, 0, 1, 1], [], []>} : vector<4x16xf32>, vector<16x256xf32>, vector<4x256xf32> -> vector<4x256xf32>
    %95 = vector.extract_strided_slice %94 {offsets = [0, 17], sizes = [4, 239], strides = [1, 1]} : vector<4x256xf32> to vector<4x239xf32>
    %96 = vector.extract_strided_slice %94 {offsets = [0, 0], sizes = [4, 17], strides = [1, 1]} : vector<4x256xf32> to vector<4x17xf32>
    %97 = tpu.concatenate %95, %96 in 1 : vector<4x239xf32>, vector<4x17xf32> -> vector<4x256xf32>
    %98 = vector.extract_strided_slice %16 {offsets = [8, 0], sizes = [1, 256], strides = [1, 1]} : vector<9x256xf32> to vector<1x256xf32>
    %99 = vector.broadcast %98 : vector<1x256xf32> to vector<4x256xf32>
    %100 = arith.mulf %97, %99 : vector<4x256xf32>
    %101 = arith.addf %91, %100 : vector<4x256xf32>
    %c0_44 = arith.constant 0 : index
    %c0_45 = arith.constant 0 : index
    %c0_46 = arith.constant 0 : index
    %102 = vector.load %arg8[%c0_44, %c0_45, %c0_46] : memref<1x12x256xf32, #tpu.memory_space<vmem>>, vector<1x8x256xf32>
    %103 = vector.shape_cast %102 : vector<1x8x256xf32> to vector<8x256xf32>
    %104 = vector.shape_cast %1 : vector<8x256xf32> to vector<1x8x256xf32>
    tpu.vector_store %arg8[%c0_44, %c0_45, %c0_46], %104 {strides = array<i32>} : memref<1x12x256xf32, #tpu.memory_space<vmem>>, vector<1x8x256xf32>,
    %c0_47 = arith.constant 0 : index
    %c8_48 = arith.constant 8 : index
    %c0_49 = arith.constant 0 : index
    %105 = vector.load %arg8[%c0_47, %c8_48, %c0_49] : memref<1x12x256xf32, #tpu.memory_space<vmem>>, vector<1x4x256xf32>
    %106 = vector.shape_cast %105 : vector<1x4x256xf32> to vector<4x256xf32>
    %107 = vector.shape_cast %101 : vector<4x256xf32> to vector<1x4x256xf32>
    tpu.vector_store %arg8[%c0_47, %c8_48, %c0_49], %107 {strides = array<i32>} : memref<1x12x256xf32, #tpu.memory_space<vmem>>, vector<1x4x256xf32>,
    return
  }
  func.func @transform_0(%arg0: i32) -> (i32, i32, i32) {
    %c0_i32 = arith.constant 0 : i32
    %c0_i32_0 = arith.constant 0 : i32
    %c0_i32_1 = arith.constant 0 : i32
    return %arg0, %c0_i32, %c0_i32_0 : i32, i32, i32
  }
  func.func @transform_1(%arg0: i32) -> (i32, i32) {
    %c0_i32 = arith.constant 0 : i32
    %c0_i32_0 = arith.constant 0 : i32
    %c0_i32_1 = arith.constant 0 : i32
    return %c0_i32, %c0_i32_0 : i32, i32
  }
  func.func @transform_2(%arg0: i32) -> (i32, i32) {
    %c0_i32 = arith.constant 0 : i32
    %c0_i32_0 = arith.constant 0 : i32
    %c0_i32_1 = arith.constant 0 : i32
    return %c0_i32, %c0_i32_0 : i32, i32
  }
  func.func @transform_3(%arg0: i32) -> (i32, i32) {
    %c0_i32 = arith.constant 0 : i32
    %c0_i32_0 = arith.constant 0 : i32
    %c0_i32_1 = arith.constant 0 : i32
    return %c0_i32, %c0_i32_0 : i32, i32
  }
  func.func @transform_4(%arg0: i32) -> (i32, i32) {
    %c0_i32 = arith.constant 0 : i32
    %c0_i32_0 = arith.constant 0 : i32
    %c0_i32_1 = arith.constant 0 : i32
    return %c0_i32, %c0_i32_0 : i32, i32
  }
  func.func @transform_5(%arg0: i32) -> (i32, i32, i32) {
    %c0_i32 = arith.constant 0 : i32
    %c0_i32_0 = arith.constant 0 : i32
    %c0_i32_1 = arith.constant 0 : i32
    %c0_i32_2 = arith.constant 0 : i32
    return %c0_i32, %c0_i32_0, %c0_i32_1 : i32, i32, i32
  }
  func.func @transform_6(%arg0: i32) -> (i32, i32) {
    %c0_i32 = arith.constant 0 : i32
    %c0_i32_0 = arith.constant 0 : i32
    %c0_i32_1 = arith.constant 0 : i32
    return %c0_i32, %c0_i32_0 : i32, i32
  }
  func.func @transform_7(%arg0: i32) -> (i32, i32, i32) {
    %c0_i32 = arith.constant 0 : i32
    %c0_i32_0 = arith.constant 0 : i32
    %c0_i32_1 = arith.constant 0 : i32
    return %arg0, %c0_i32, %c0_i32_0 : i32, i32, i32
  }
}

</mosaic_0001>

<bundles_post_ra>
// kernel: _lambda_.1
= control target key start
LH: loop header
LB: loop body
LE: loop exit
PB: predicated region body
PF: predicated region fallthrough
CT: control target
= control target key end

     0   :  { %s1555_s24 = smov 0   ;;  %s1682_s0 = inlined_call_operand.vmem [shape: f32[2,8,256], index: 0, kind: input, shape index: {}]   ;;  %s1683_s1 = inlined_call_operand.vmem [shape: f32[8,8], index: 1, kind: input, shape index: {}]   ;;  %s1684_s2 = inlined_call_operand.vmem [shape: f32[8,1], index: 2, kind: input, shape index: {}]   ;;  %s1685_s3 = inlined_call_operand.vmem [shape: f32[16,8], index: 3, kind: input, shape index: {}]   ;;  %s1686_s4 = inlined_call_operand.vmem [shape: f32[16,1], index: 4, kind: input, shape index: {}]   ;;  %s1687_s5 = inlined_call_operand.vmem [shape: f32[9,4,16], index: 5, kind: input, shape index: {}]   ;;  %s1688_s6 = inlined_call_operand.vmem [shape: f32[9,256], index: 6, kind: input, shape index: {}]   ;;  %s1689_s7 = inlined_call_operand.vmem [shape: f32[2,12,256], index: 7, kind: output, shape index: {}]  }
   0x1 LB: > { %s1406_s25 = sadd.s32 4294967295, %s1503_s24   ;;  %p1410_p0 = scmp.ge.s32.totalorder %s1503_s24, 1  ;;  %s1503_s24 = sphi %s1555_s24, %s17_s24  }
   0x2   : > { %p237_p1 = scmp.lt.s32.totalorder %s1503_s24, 3 }
   0x4   : > { %p238_p2 = pnand %p1410_p0, %p237_p1 }
   0x5   : > { %p269_p3 = scmp.lt.s32.totalorder (!%p238_p2), %s1406_s25, 1  ;;  %v282_v0 = vld [vmem:[%s1684_s2] sm:$0xff] (!%p238_p2)  ;;  %v1505_v1 = vmov (!%p238_p2), 0.0   ;;  %v1506_v2 = vmov (!%p238_p2), 0   ;;  %vm288_vm0 = vcmask (!%p238_p2), 64512   ;;  %v368_v7 = vld [vmem:[%s1686_s4 + $0x8] sm:$0xff] (!%p238_p2)  ;;  %v558_v60 = vlaneseq (!%p238_p2) }
   0x6   : > { %241 = sbr.rel (%p238_p2) target bundleno = 827 (0x33b), region = 48  ;;  %356 = vmatprep.mubr.f32.mxu0 (!%p238_p2), %v1505_v1  ;;  %1495 = vset.pattern.permute.xlu0 (!%p238_p2), %v1506_v2  ;;  %v367_v3 = vld [vmem:[%s1686_s4] sm:$0xff] (!%p238_p2)  ;;  %v366_v16 = vld [vmem:[%s1685_s3 + $0x8] sm:$0xff] (!%p238_p2)  ;;  %vm471_vm1 = vcmask (!%p238_p2), 130048   ;;  %v1425_v36 = vld [vmem:[%s1687_s5 + $0x10] sm:$0xf] (!%p238_p2) }
   0x7   : > { %285 = vperm.xlu0 (!%p238_p2), %1495, %v282_v0   ;;  %449 = vmatprep.mubr.f32.mxu1 (!%p238_p2), %v1505_v1  ;;  %v281_v6 = vld [vmem:[%s1683_s1] sm:$0xff] (!%p238_p2)  ;;  %v1421_v34 = vld [vmem:[%s1687_s5 + $0x8] sm:$0xf] (!%p238_p2)  ;;  %v1423_v37 = vld [vmem:[%s1687_s5 + $0xc] sm:$0xf] (!%p238_p2)  ;;  %s1507_s20 = smov (!%p238_p2), 17  }
   0x8   : > { %1496 = vset.pattern.permute.xlu1 (!%p238_p2), %v1506_v2  ;;  %v365_v15 = vld [vmem:[%s1685_s3] sm:$0xff] (!%p238_p2)  ;;  %v1429_v38 = vld [vmem:[%s1687_s5 + $0x18] sm:$0xf] (!%p238_p2)  ;;  %v1427_v39 = vld [vmem:[%s1687_s5 + $0x14] sm:$0xf] (!%p238_p2)  ;;  %s1508_s21 = smov (!%p238_p2), 15  }
   0x9   : > { %376 = vperm.xlu1 (!%p238_p2), %1496, %v368_v7   ;;  %v470_v33 = vld [vmem:[%s1687_s5] sm:$0xf] (!%p238_p2)  ;;  %v1419_v35 = vld [vmem:[%s1687_s5 + $0x4] sm:$0xf] (!%p238_p2)  ;;  %v1431_v41 = vld [vmem:[%s1687_s5 + $0x1c] sm:$0xf] (!%p238_p2) }
   0xa   : > { %v1433_v40 = vld [vmem:[%s1687_s5 + $0x20] sm:$0xf] (!%p238_p2)  ;;  %s1509_s22 = smov (!%p238_p2), 16   ;;  %s1510_s23 = smov (!%p238_p2), 1   ;;  %v1646_v62 = vshrl.u32 (!%p238_p2), %v558_v60, 7  ;;  %vm553_vm2 = vcmask (!%p238_p2), 138240  }
   0xb   : > { %371 = vperm.xlu0 (!%p238_p2), %1495, %v367_v3   ;;  %s1512_s26 = smov (!%p238_p2), 127   ;;  %s1513_s27 = smov (!%p238_p2), 112   ;;  %vm752_vm3 = vcmask (!%p238_p2), 121856   ;;  %vm852_vm4 = vcmask (!%p238_p2), 7168   ;;  %vm1129_vm5 = vcmask (!%p238_p2), 924672   ;;  %vm1029_vm6 = vcmask (!%p238_p2), 1039360  }
   0xc   : > { %s1514_s28 = smov (!%p238_p2), 111   ;;  %v659_v0 = vsub.s32 (!%p238_p2), 1, %v1646_v62  ;;  %v560_v2 = vsub.s32 (!%p238_p2), 0, %v1646_v62  ;;  %vm1229_vm7 = vcmask (!%p238_p2), 916480   ;;  %vm1329_vm8 = vcmask (!%p238_p2), 908288  }
   0xd   : > { %s1691_s25 = smov (!%p269_p3, %s1406_s25), 1 }
   0xe   : > { %s1439_s30 = sshll.u32 %s1691_s25, 4  ;;  %s1440_s8 = sshll.u32 %s1691_s25, 5 }
   0xf   : > { %s273_s11 = scalar_lea.vmem %s1682_s0, %s1439_s30  ;;  %s1577_s14 = scalar_lea.vmem %s1689_s7, %s1440_s8 }
  0x10   : > { %v280_v4 = vld [vmem:[%s273_s11 + $0x8] sm:$0xff]  ;;  %v279_v5 = vld [vmem:[%s273_s11] sm:$0xff]  ;;  %s1511_s25 = smov 113  }
  0x11   : > { %292 = vmatprep.subr.mxu0 %v280_v4  ;;  %1348 = vst [vmem:[%s1577_s14 + $0x8] sm:$0xff] %v280_v4  ;;  %1347 = vst [vmem:[%s1577_s14] sm:$0xff] %v279_v5  ;;  %v466_v4 = vld [vmem:[%s1688_s6] sm:$0xff] }
  0x12   : > { %293 = vmatpush1.msra.mxu0 %v279_v5  ;;  %v467_v5 = vld [vmem:[%s1688_s6 + $0x8] sm:$0xff] }
  0x13   : > { %1415 = vmatmul.mubr.msk.f32.vlgmr.msra.gmra.mrb[0].mxu0 %vm288_vm0, %v281_v6  ;;  %v660_v6 = vrot.slane %v466_v4, %v659_v0  ;;  %v664_v7 = vrot.slane %v467_v5, %v659_v0 }
  0x14   : > { %539 = vmatprep.mubr.f32.mxu0 %v1505_v1 }
  0x86   : > { %v286_v8 = vpop.permute.xlu0 %285 }
  0x88   : > { %v377_v20 = vpop.permute.xlu1 %376 }
  0x8a   : > { %v372_v19 = vpop.permute.xlu0 %371 }
  0xe6   : > { %v358_v9 = vpop.f32.mrb[0].mxu0 }
  0xe7   : > { %v359_v10 = vadd.f32 %v358_v9, %v286_v8  ;;  %v360_v11 = vpop.f32.mrb[1].mxu0  ;;  %v561_v9 = vrot.slane %v466_v4, %v560_v2 }
  0xe8   : > { %v361_v12 = vadd.f32 %v360_v11, %v286_v8  ;;  %v759_v11 = vsub.s32 2, %v1646_v62 }
  0xe9   : > { %v363_v14 = vmax.f32 %v359_v10, 0.0  ;;  %v565_v10 = vrot.slane %v467_v5, %v560_v2 }
  0xea   : > { %v364_v13 = vmax.f32 %v361_v12, 0.0 }
  0xec   : > { %385 = vmatprep.subr.mxu1 %v364_v13 }
  0xed   : > { %386 = vmatpush1.msra.mxu1 %v363_v14 }
  0xee   : > { %1416 = vmatmul.mubr.msk.f32.vlgmr.msra.gmra.mrb[0].mxu1 %vm288_vm0, %v365_v15 }
  0xef   : > { %455 = vmatprep.mubr.f32.mxu1 %v1505_v1 }
  0xf2   : > { %1417 = vmatmul.mubr.msk.f32.gmra.mrb[2].mxu1 %vm288_vm0, %v366_v16 }
  0xf3   : > { %738 = vmatprep.mubr.f32.mxu1 %v1505_v1 }
 0x1c1   : > { %v451_v17 = vpop.f32.mrb[0].mxu1 }
 0x1c2   : > { %v453_v18 = vpop.f32.mrb[1].mxu1  ;;  %v452_v21 = vadd.f32 %v451_v17, %v372_v19 }
 0x1c3   : > { %v454_v22 = vadd.f32 %v453_v18, %v372_v19  ;;  %v859_v19 = vsub.s32 3, %v1646_v62 }
 0x1c4   : > { %v462_v27 = vmax.f32 %v452_v21, 0.0 }
 0x1c5   : > { %v457_v23 = vpop.f32.mrb[2].mxu1  ;;  %v463_v29 = vmax.f32 %v454_v22, 0.0 }
 0x1c6   : > { %v458_v24 = vadd.f32 %v457_v23, %v377_v20  ;;  %v459_v25 = vpop.f32.mrb[3].mxu1  ;;  %v760_v23 = vrot.slane %v466_v4, %v759_v11 }
 0x1c7   : > { %v460_v26 = vadd.f32 %v459_v25, %v377_v20 }
 0x1c8   : > { %v464_v28 = vmax.f32 %v458_v24, 0.0  ;;  %v764_v24 = vrot.slane %v467_v5, %v759_v11 }
 0x1c9   : > { %v465_v30 = vmax.f32 %v460_v26, 0.0 }
 0x1ca   : > { %v1443_v31 = vpack.c.bf16 %v464_v28, %v462_v27  ;;  %v1037_v28 = vsub.s32 5, %v1646_v62 }
 0x1cb   : > { %v1441_v32 = vpack.c.bf16 %v465_v30, %v463_v29 }
 0x1cd   : > { %1442 = vmatprep.subr.bf16.mxu0 %v1441_v32  ;;  %1450 = vmatprep.subr.bf16.mxu1 %v1441_v32 }
 0x1ce   : > { %1444 = vmatpush1.bf16.msra.mxu0 %v1443_v31  ;;  %1452 = vmatpush1.bf16.msra.mxu1 %v1443_v31 }
 0x1cf   : > { %1446 = vmatprep.subr.bf16.mxu0 %v1441_v32  ;;  %1458 = vmatprep.subr.bf16.mxu1 %v1441_v32 }
 0x1d1   : > { %1418 = vmatmul.mubr.msk.f32.vlgmr.msra.gmra.mrb[2].mxu0 %vm471_vm1, %v470_v33  ;;  %1422 = vmatmul.mubr.msk.f32.vlgmr.msra.gmra.mrb[4].mxu1 %vm471_vm1, %v1421_v34  ;;  %v1137_v33 = vsub.s32 6, %v1646_v62 }
 0x1d2   : > { %1448 = vmatpush1.bf16.msra.mxu0 %v1443_v31  ;;  %1460 = vmatpush1.bf16.msra.mxu1 %v1443_v31 }
 0x1d3   : > { %1454 = vmatprep.subr.bf16.mxu0 %v1441_v32  ;;  %1466 = vmatprep.subr.bf16.mxu1 %v1441_v32 }
 0x1d4   : > { %639 = vmatprep.mubr.f32.mxu0 %v1505_v1  ;;  %938 = vmatprep.mubr.f32.mxu1 %v1505_v1 }
 0x1d5   : > { %1420 = vmatmul.mubr.msk.f32.vlgmr.msra.gmra.mrb[4].mxu0 %vm471_vm1, %v1419_v35  ;;  %1426 = vmatmul.mubr.msk.f32.vlgmr.msra.gmra.mrb[6].mxu1 %vm471_vm1, %v1425_v36 }
 0x1d6   : > { %1456 = vmatpush1.bf16.msra.mxu0 %v1443_v31  ;;  %1468 = vmatpush1.bf16.msra.mxu1 %v1443_v31 }
 0x1d7   : > { %1462 = vmatprep.subr.bf16.mxu0 %v1441_v32  ;;  %1474 = vmatprep.subr.bf16.mxu1 %v1441_v32 }
 0x1d8   : > { %838 = vmatprep.mubr.f32.mxu0 %v1505_v1  ;;  %1116 = vmatprep.mubr.f32.mxu1 %v1505_v1 }
 0x1d9   : > { %1424 = vmatmul.mubr.msk.f32.vlgmr.msra.gmra.mrb[6].mxu0 %vm471_vm1, %v1423_v37  ;;  %1430 = vmatmul.mubr.msk.f32.vlgmr.msra.gmra.mrb[8].mxu1 %vm471_vm1, %v1429_v38  ;;  %v1237_v38 = vsub.s32 7, %v1646_v62 }
 0x1da   : > { %1464 = vmatpush1.bf16.msra.mxu0 %v1443_v31  ;;  %1476 = vmatpush1.bf16.msra.mxu1 %v1443_v31 }
 0x1db   : > { %1470 = vmatprep.subr.bf16.mxu0 %v1441_v32  ;;  %1016 = vmatprep.mubr.f32.mxu0 %v1505_v1  ;;  %v864_v32 = vrot.slane %v467_v5, %v859_v19 }
 0x1dc   : > { %1316 = vmatprep.mubr.f32.mxu1 %v1505_v1 }
 0x1dd   : > { %1428 = vmatmul.mubr.msk.f32.vlgmr.msra.gmra.mrb[8].mxu0 %vm471_vm1, %v1427_v39  ;;  %1434 = vmatmul.mubr.msk.f32.vlgmr.msra.gmra.mrb[10].mxu1 %vm471_vm1, %v1433_v40 }
 0x1de   : > { %1472 = vmatpush1.bf16.msra.mxu0 %v1443_v31  ;;  %1216 = vmatprep.mubr.f32.mxu0 %v1505_v1  ;;  %v860_v31 = vrot.slane %v466_v4, %v859_v19 }
 0x1e1   : > { %1432 = vmatmul.mubr.msk.f32.vlgmr.msra.gmra.mrb[10].mxu0 %vm471_vm1, %v1431_v41  ;;  %v1038_v41 = vrot.slane %v466_v4, %v1037_v28 }
 0x2a4   : > { %v541_v42 = vpop.f32.mrb[2].mxu0  ;;  %v740_v43 = vpop.f32.mrb[4].mxu1 }
 0x2a5   : > { %551 = vrot.lane.b32.xlu0 %v541_v42, %s1507_s20  ;;  %v543_v44 = vpop.f32.mrb[3].mxu0  ;;  %v742_v45 = vpop.f32.mrb[5].mxu1  ;;  %v1042_v42 = vrot.slane %v467_v5, %v1037_v28 }
 0x2a6   : > { %547 = vrot.lane.b32.xlu1 %v543_v44, %s1507_s20 }
 0x2a8   : > { %v641_v46 = vpop.f32.mrb[4].mxu0  ;;  %v1642_v47 = vpop.f32.mrb[6].mxu1 }
 0x2a9   : > { %750 = vrot.lane.b32.xlu0 %v740_v43, %s1508_s21  ;;  %v643_v48 = vpop.f32.mrb[5].mxu0  ;;  %v1644_v49 = vpop.f32.mrb[7].mxu1 }
 0x2aa   : > { %746 = vrot.lane.b32.xlu1 %v742_v45, %s1508_s21 }
 0x2ac   : > { %v840_v50 = vpop.f32.mrb[6].mxu0  ;;  %v1118_v51 = vpop.f32.mrb[8].mxu1 }
 0x2ad   : > { %651 = vrot.lane.b32.xlu0 %v641_v46, %s1509_s22  ;;  %v1120_v52 = vpop.f32.mrb[9].mxu1  ;;  %v842_v53 = vpop.f32.mrb[7].mxu0 }
 0x2ae   : > { %647 = vrot.lane.b32.xlu1 %v643_v48, %s1509_s22  ;;  %v1138_v48 = vrot.slane %v466_v4, %v1137_v33 }
 0x2b0   : > { %v1018_v54 = vpop.f32.mrb[8].mxu0  ;;  %v1318_v55 = vpop.f32.mrb[10].mxu1 }
 0x2b1   : > { %850 = vrot.lane.b32.xlu0 %v840_v50, %s1510_s23  ;;  %v1020_v56 = vpop.f32.mrb[9].mxu0  ;;  %v1320_v57 = vpop.f32.mrb[11].mxu1  ;;  %v1142_v50 = vrot.slane %v467_v5, %v1137_v33 }
 0x2b2   : > { %1125 = vrot.lane.b32.xlu1 %v1118_v51, %s1511_s25 }
 0x2b4   : > { %v1218_v58 = vpop.f32.mrb[10].mxu0 }
 0x2b5   : > { %1127 = vrot.lane.b32.xlu0 %v1120_v52, %s1511_s25  ;;  %v1220_v59 = vpop.f32.mrb[11].mxu0 }
 0x2b6   : > { %846 = vrot.lane.b32.xlu1 %v842_v53, %s1510_s23 }
 0x2b9   : > { %1027 = vrot.lane.b32.xlu0 %v1020_v56, %s1512_s26  ;;  %v1242_v56 = vrot.slane %v467_v5, %v1237_v38 }
 0x2ba   : > { %1025 = vrot.lane.b32.xlu1 %v1018_v54, %s1512_s26 }
 0x2bd   : > { %1227 = vrot.lane.b32.xlu0 %v1220_v59, %s1513_s27 }
 0x2be   : > { %1225 = vrot.lane.b32.xlu1 %v1218_v58, %s1513_s27 }
 0x2c1   : > { %1327 = vrot.lane.b32.xlu0 %v1320_v57, %s1514_s28 }
 0x2c2   : > { %1325 = vrot.lane.b32.xlu1 %v1318_v55, %s1514_s28  ;;  %v1238_v55 = vrot.slane %v466_v4, %v1237_v38 }
 0x317   : > { %v552_v61 = vpop.permute.xlu0 %551 }
 0x318   : > { %v548_v63 = vpop.permute.xlu1 %547 }
 0x319   : > { %v554_v13 = vsel %vm553_vm2, %v552_v61, %v548_v63  ;;  %v557_v14 = vsel %vm553_vm2, %v548_v63, %v552_v61 }
 0x31a   : > { %v566_v21 = vmul.f32 %v561_v9, %v557_v14  ;;  %v567_v22 = vmul.f32 %v565_v10, %v554_v13 }
 0x31b   : > { %v751_v1 = vpop.permute.xlu0 %750 }
 0x31c   : > { %v747_v3 = vpop.permute.xlu1 %746 }
 0x31d   : > { %v753_v26 = vsel %vm752_vm3, %v751_v1, %v747_v3  ;;  %v756_v27 = vsel %vm752_vm3, %v747_v3, %v751_v1 }
 0x31e   : > { %v765_v35 = vmul.f32 %v760_v23, %v756_v27  ;;  %v766_v36 = vmul.f32 %v764_v24, %v753_v26 }
 0x31f   : > { %v652_v8 = vpop.permute.xlu0 %651 }
 0x320   : > { %v648_v12 = vpop.permute.xlu1 %647 }
 0x321   : > { %v653_v15 = vsel %vm471_vm1, %v652_v8, %v648_v12  ;;  %v656_v16 = vsel %vm471_vm1, %v648_v12, %v652_v8  ;;  %v1436_v12 = vld [vmem:[%s1688_s6 + $0x18] ss:$0 sm:$0xff] }
 0x322   : > { %v665_v17 = vmul.f32 %v660_v6, %v656_v16  ;;  %v666_v18 = vmul.f32 %v664_v7, %v653_v15 }
 0x323   : > { %v851_v20 = vpop.permute.xlu0 %850 }
 0x324   : > { %v1126_v25 = vpop.permute.xlu1 %1125  ;;  %v667_v29 = vadd.f32 %v665_v17, %v566_v21  ;;  %v668_v30 = vadd.f32 %v666_v18, %v567_v22 }
 0x326   : > { %v767_v43 = vadd.f32 %v765_v35, %v667_v29  ;;  %v768_v44 = vadd.f32 %v766_v36, %v668_v30 }
 0x327   : > { %v1128_v34 = vpop.permute.xlu0 %1127 }
 0x328   : > { %v847_v37 = vpop.permute.xlu1 %846  ;;  %v1130_v57 = vsel %vm1129_vm5, %v1126_v25, %v1128_v34  ;;  %v1134_v58 = vsel %vm1129_vm5, %v1128_v34, %v1126_v25 }
 0x329   : > { %v853_v39 = vsel %vm852_vm4, %v851_v20, %v847_v37  ;;  %v856_v40 = vsel %vm852_vm4, %v847_v37, %v851_v20  ;;  %v1143_v2 = vmul.f32 %v1138_v48, %v1130_v57  ;;  %v1144_v3 = vmul.f32 %v1142_v50, %v1134_v58 }
 0x32a   : > { %v865_v45 = vmul.f32 %v860_v31, %v856_v40  ;;  %v866_v46 = vmul.f32 %v864_v32, %v853_v39 }
 0x32b   : > { %v1028_v51 = vpop.permute.xlu0 %1027 }
 0x32c   : > { %v867_v52 = vadd.f32 %v865_v45, %v767_v43  ;;  %v868_v53 = vadd.f32 %v866_v46, %v768_v44  ;;  %v1026_v54 = vpop.permute.xlu1 %1025 }
 0x32d   : > { %v1030_v59 = vsel %vm1029_vm6, %v1026_v54, %v1028_v51  ;;  %v1034_v60 = vsel %vm1029_vm6, %v1028_v51, %v1026_v54 }
 0x32e   : > { %v945_v61 = vadd.f32 %v1642_v47, %v867_v52  ;;  %v946_v62 = vadd.f32 %v1644_v49, %v868_v53  ;;  %v1043_v63 = vmul.f32 %v1038_v41, %v1030_v59  ;;  %v1044_v0 = vmul.f32 %v1042_v42, %v1034_v60  ;;  %v1435_v49 = vld [vmem:[%s1688_s6 + $0x10] ss:$0 sm:$0xff] }
 0x32f   : > { %v1228_v1 = vpop.permute.xlu0 %1227 }
 0x330   : > { %v1045_v6 = vadd.f32 %v1043_v63, %v945_v61  ;;  %v1046_v4 = vadd.f32 %v1044_v0, %v946_v62  ;;  %v1226_v5 = vpop.permute.xlu1 %1225 }
 0x331   : > { %v1230_v7 = vsel %vm1229_vm7, %v1226_v5, %v1228_v1  ;;  %v1234_v8 = vsel %vm1229_vm7, %v1228_v1, %v1226_v5 }
 0x332   : > { %v1145_v9 = vadd.f32 %v1143_v2, %v1045_v6  ;;  %v1146_v10 = vadd.f32 %v1144_v3, %v1046_v4  ;;  %v1243_v47 = vmul.f32 %v1238_v55, %v1230_v7  ;;  %v1244_v11 = vmul.f32 %v1242_v56, %v1234_v8 }
 0x333   : > { %v1328_v13 = vpop.permute.xlu0 %1327 }
 0x334   : > { %v1326_v14 = vpop.permute.xlu1 %1325  ;;  %v1245_v17 = vadd.f32 %v1243_v47, %v1145_v9  ;;  %v1246_v18 = vadd.f32 %v1244_v11, %v1146_v10 }
 0x335   : > { %v1330_v15 = vsel %vm1329_vm8, %v1326_v14, %v1328_v13  ;;  %v1334_v16 = vsel %vm1329_vm8, %v1328_v13, %v1326_v14 }
 0x336   : > { %v1343_v19 = vmul.f32 %v1435_v49, %v1330_v15  ;;  %v1344_v20 = vmul.f32 %v1436_v12, %v1334_v16 }
 0x338   : > { %v1345_v21 = vadd.f32 %v1343_v19, %v1245_v17  ;;  %v1346_v22 = vadd.f32 %v1344_v20, %v1246_v18 }
 0x33a   : > { %1349 = vst [vmem:[%s1577_s14 + $0x10] sm:$0xf] %v1345_v21  ;;  %1350 = vst [vmem:[%s1577_s14 + $0x18] sm:$0xf] %v1346_v22 }
 0x33b PF: > { %s17_s24 = sadd.s32 1, %s1503_s24  }
 0x33c   : > { %p14_p4 = scmp.ge.s32.totalorder %s17_s24, 4  }
 0x33e   :  { %16 = sbr.rel (!%p14_p4) target bundleno = 1 (0x1), region = 86 }

</bundles_post_ra>
